<compile_context>
chip_gen: v7x
topology: tpu7x:2x2x1
jax: 0.10.0
libtpu: 0.0.40
codegen_flags: <defaults>
</compile_context>

<pallas_src>
import functools

import jax
import jax.numpy as jnp
from jax import lax
from jax.experimental import pallas as pl
from jax.experimental.pallas import tpu as pltpu


def _ls_ce_kernel(tgt_ref, x_ref, nll_out, sm_out, cnt_out,
                  nll_acc, sm_acc, cnt_acc, *,
                  n_rows, tile_n, num_chunks, pad_sentinel):
    """Grid = (chunks [parallel], steps [arbitrary]).  Emits per-chunk partials."""
    c = pl.program_id(0)
    s = pl.program_id(1)

    @pl.when(s == 0)
    def _init():
        nll_acc[...] = jnp.zeros_like(nll_acc)
        sm_acc[...] = jnp.zeros_like(sm_acc)
        cnt_acc[...] = jnp.zeros_like(cnt_acc)

    x = x_ref[...]                                   # (TN, V) native dtype (f32/bf16)
    tgt = tgt_ref[...]                               # (TN, 1) int32
    V = x.shape[-1]

    # Validity mask from the *nominal* (un-clamped) global row index.  Fully-OOB
    # tiles (clamped by the index_map to re-read the last tile) and the ragged tail
    # of the edge tile are masked out here; combined with the padding mask.
    tile = s * num_chunks + c
    row0 = tile * tile_n
    rows = row0 + lax.broadcasted_iota(jnp.int32, (x.shape[0], 1), 0)
    mask = (rows < n_rows) & (tgt != pad_sentinel)   # (TN, 1) bool

    # Native-dtype passes (exact even for bf16): per-row max, target gather.
    m_nat = jnp.max(x, axis=-1, keepdims=True)                       # (TN, 1)
    col = lax.broadcasted_iota(jnp.int32, x.shape, 1)                # (TN, V)
    picked = jnp.sum(jnp.where(col == tgt, x, 0), axis=-1,
                     keepdims=True).astype(jnp.float32)              # x[i, t_i]
    m = m_nat.astype(jnp.float32)

    # One shared f32 pass:  d = x - m
    #   lse    = m + log(sum(exp(d)))
    #   sum(x) = sum(d) + V*m   =>   smooth = V*lse - sum(x) = V*log(sum(exp(d))) - sum(d)
    d = x.astype(jnp.float32) - m                                    # (TN, V) f32
    e = jnp.exp(d)
    sum_e = jnp.sum(e, axis=-1, keepdims=True)                       # (TN, 1)
    sum_d = jnp.sum(d, axis=-1, keepdims=True)                       # (TN, 1)
    log_se = jnp.log(sum_e)

    nll = (m + log_se) - picked                                      # lse - x[i,t_i]
    smooth = V * log_se - sum_d                                      # V*lse - sum_j x[i,j]

    # NaN-safe masked accumulation (select, not multiply: OOB/edge garbage rows may
    # contain arbitrary bits, including NaN).
    nll_acc[...] += jnp.where(mask, nll, 0.0)
    sm_acc[...] += jnp.where(mask, smooth, 0.0)
    cnt_acc[...] += mask.astype(jnp.int32)

    @pl.when(s == pl.num_programs(1) - 1)
    def _finalize():
        nll_out[...] = jnp.reshape(jnp.sum(nll_acc[...], keepdims=True),
                                   nll_out.shape)
        sm_out[...] = jnp.reshape(jnp.sum(sm_acc[...], keepdims=True),
                                  sm_out.shape)
        cnt_out[...] = jnp.reshape(jnp.sum(cnt_acc[...], keepdims=True),
                                   cnt_out.shape)


def _select_tiling(n_rows, vocab, itemsize, num_chunks, max_tile_rows, vmem_target):
    """Pick tile_n / chunks / steps given a VMEM budget that includes f32 temps."""
    sub = max(8, 32 // itemsize)                  # sublane packing: f32 -> 8, bf16 -> 16
    # Per tile row: 2 pipeline buffers of the native-dtype block plus roughly three
    # full-width 32-bit temporaries inside the kernel (d, exp(d), lane iota).
    per_row = vocab * (2 * itemsize + 3 * 4)
    min_footprint = sub * per_row
    if min_footprint > (56 << 20):
        # TODO(synk): V grid axis + online (flash-style) LSE for huge vocabularies.
        raise ValueError(
            f"vocab={vocab} too large for single-axis tiling "
            f"(minimum VMEM footprint {min_footprint >> 20} MiB)")
    rows_fit = max(sub, (vmem_target // per_row) // sub * sub)
    tile_n = min(int(rows_fit), int(max_tile_rows), int(pl.cdiv(n_rows, sub)) * sub)
    tile_n = int(max(sub, (tile_n // sub) * sub))
    tiles = int(pl.cdiv(n_rows, tile_n))
    num_chunks = int(max(1, min(num_chunks, tiles)))
    steps = int(pl.cdiv(tiles, num_chunks))
    return tile_n, tiles, num_chunks, steps


def label_smoothed_cross_entropy(logits, target, *, eps, padding_idx=None,
                                 size_average=False, num_chunks=4,
                                 max_tile_rows=1024,
                                 vmem_target_bytes=40 * 1024 * 1024):
    """Returns (loss, sample_size) matching the PyTorch module's forward.

    logits: (N, V) float (f32 or bf16 -- streamed in native dtype); target: (N,) int.
    Note: if padding_idx is None the PyTorch module would raise (sample_size
    undefined); here we report the total row count instead.
    """
    N, V = logits.shape
    itemsize = jnp.dtype(logits.dtype).itemsize
    tile_n, tiles, num_chunks, steps = _select_tiling(
        N, V, itemsize, num_chunks, max_tile_rows, vmem_target_bytes)

    pad_sentinel = int(padding_idx) if padding_idx is not None else -1
    tgt2d = target.reshape(N, 1).astype(jnp.int32)    # no padding of logits or targets

    kernel = functools.partial(
        _ls_ce_kernel, n_rows=N, tile_n=tile_n, num_chunks=num_chunks,
        pad_sentinel=pad_sentinel)

    last_tile = tiles - 1

    def row_block(c, s):
        # Round-robin tile assignment (balances steps across chunks / TCs); clamp
        # fully-OOB tiles onto the last valid tile -- the kernel masks them out.
        return (jnp.minimum(s * num_chunks + c, last_tile), 0)

    out_block = lambda c, s: (c, 0, 0)

    # Actual VMEM footprint: double-buffered native logits block, ~3 f32-wide kernel
    # temps, plus targets blocks / scratch / outputs (all lane-padded, small).
    footprint = (2 * tile_n * V * itemsize + 3 * tile_n * V * 4
                 + 8 * tile_n * 128 * 4)
    vmem_limit = int(min(max(footprint + (8 << 20), 32 << 20), 64 << 20))

    nll_p, sm_p, cnt_p = pl.pallas_call(
        kernel,
        out_shape=(
            jax.ShapeDtypeStruct((num_chunks, 1, 1), jnp.float32),
            jax.ShapeDtypeStruct((num_chunks, 1, 1), jnp.float32),
            jax.ShapeDtypeStruct((num_chunks, 1, 1), jnp.int32),
        ),
        grid_spec=pltpu.PrefetchScalarGridSpec(
            num_scalar_prefetch=0,
            grid=(num_chunks, steps),
            in_specs=[
                pl.BlockSpec((tile_n, 1), row_block),   # targets (int32)
                pl.BlockSpec((tile_n, V), row_block),   # logits, native dtype
            ],
            out_specs=[
                pl.BlockSpec((1, 1, 1), out_block),     # per-chunk nll partial sum
                pl.BlockSpec((1, 1, 1), out_block),     # per-chunk smooth partial sum
                pl.BlockSpec((1, 1, 1), out_block),     # per-chunk non-pad count
            ],
            scratch_shapes=[
                pltpu.VMEM((tile_n, 1), jnp.float32),   # per-row nll accumulator
                pltpu.VMEM((tile_n, 1), jnp.float32),   # per-row smooth accumulator
                pltpu.VMEM((tile_n, 1), jnp.int32),     # per-row non-pad count
            ],
        ),
        compiler_params=pltpu.CompilerParams(
            dimension_semantics=("parallel", "arbitrary"),
            vmem_limit_bytes=vmem_limit),
    )(tgt2d, logits)

    nll_s = jnp.sum(nll_p)
    sm_s = jnp.sum(sm_p)
    cnt = jnp.sum(cnt_p)
    if size_average:
        # matches PyTorch .mean(): NaN if every row is padding
        denom = cnt.astype(jnp.float32)
        nll_s = nll_s / denom
        sm_s = sm_s / denom
    eps_i = eps / V
    loss = (1.0 - eps) * nll_s + eps_i * sm_s
    return loss, cnt


def _reference(logits, target, *, eps, padding_idx=None, size_average=False):
    lprobs = jax.nn.log_softmax(logits.astype(jnp.float32), axis=-1)
    t = target.reshape(-1)
    nll = -jnp.take_along_axis(lprobs, t[:, None], axis=-1)[:, 0]
    smooth = -jnp.sum(lprobs, axis=-1)
    if padding_idx is not None:
        mask = (t != padding_idx).astype(jnp.float32)
    else:
        mask = jnp.ones_like(t, dtype=jnp.float32)
    cnt = jnp.sum(mask)
    nll_s = jnp.sum(nll * mask)
    sm_s = jnp.sum(smooth * mask)
    if size_average:
        nll_s = nll_s / cnt
        sm_s = sm_s / cnt
    eps_i = eps / logits.shape[-1]
    loss = (1.0 - eps) * nll_s + eps_i * sm_s
    return loss, cnt.astype(jnp.int32)


if __name__ == "__main__":
    eps = 0.1
    padding_idx = 1
    key = jax.random.PRNGKey(0)

    # ---- test 1: small canonical shapes (batch=2, seq=8 -> N=16 rows, vocab=32), f32
    N, V = 16, 32
    k_logit, k_tgt, key = jax.random.split(key, 3)
    logits = jax.random.normal(k_logit, (N, V), dtype=jnp.float32)
    target = jax.random.randint(k_tgt, (N,), 0, V, dtype=jnp.int32)
    target = target.at[0].set(padding_idx).at[5].set(padding_idx)

    # NOTE: the `weight` buffer from the PyTorch module is unused in forward; skipped.
    loss, sample_size = label_smoothed_cross_entropy(
        logits, target, eps=eps, padding_idx=padding_idx, size_average=False)
    loss = jax.block_until_ready(loss)
    sample_size = jax.block_until_ready(sample_size)
    ref_loss, ref_cnt = _reference(
        logits, target, eps=eps, padding_idx=padding_idx, size_average=False)
    assert jnp.allclose(loss, ref_loss, rtol=1e-5, atol=1e-4), (loss, ref_loss)
    assert int(sample_size) == int(ref_cnt), (sample_size, ref_cnt)

    # ---- test 2: bf16 logits, non-divisible N (ragged edge block, NO padding),
    #              forced multi-step accumulation + size_average
    N2, V2 = 40, 128
    k_logit2, k_tgt2, key = jax.random.split(key, 3)
    logits2 = jax.random.normal(k_logit2, (N2, V2), dtype=jnp.float32).astype(jnp.bfloat16)
    target2 = jax.random.randint(k_tgt2, (N2,), 0, V2, dtype=jnp.int32)
    target2 = target2.at[3].set(padding_idx).at[17].set(padding_idx)

    loss2, cnt2 = label_smoothed_cross_entropy(
        logits2, target2, eps=eps, padding_idx=padding_idx, size_average=True,
        num_chunks=1, max_tile_rows=8)   # tile_n = packing minimum -> steps > 1
    loss2 = jax.block_until_ready(loss2)
    cnt2 = jax.block_until_ready(cnt2)
    ref_loss2, ref_cnt2 = _reference(
        logits2, target2, eps=eps, padding_idx=padding_idx, size_average=True)
    assert jnp.allclose(loss2, ref_loss2, rtol=1e-4, atol=1e-3), (loss2, ref_loss2)
    assert int(cnt2) == int(ref_cnt2), (cnt2, ref_cnt2)

    # ---- test 3: f32, N not divisible by tile_n, V not a multiple of 128, multiple
    #              chunks AND steps (exercises clamped fully-OOB tiles + edge tile).
    N3, V3 = 300, 200
    k_logit3, k_tgt3, key = jax.random.split(key, 3)
    logits3 = jax.random.normal(k_logit3, (N3, V3), dtype=jnp.float32)
    target3 = jax.random.randint(k_tgt3, (N3,), 0, V3, dtype=jnp.int32)
    target3 = target3.at[7].set(padding_idx).at[100].set(padding_idx).at[299].set(padding_idx)

    loss3, cnt3 = label_smoothed_cross_entropy(
        logits3, target3, eps=eps, padding_idx=padding_idx, size_average=False,
        num_chunks=4, max_tile_rows=32)
    loss3 = jax.block_until_ready(loss3)
    cnt3 = jax.block_until_ready(cnt3)
    ref_loss3, ref_cnt3 = _reference(
        logits3, target3, eps=eps, padding_idx=padding_idx, size_average=False)
    assert jnp.allclose(loss3, ref_loss3, rtol=1e-4, atol=1e-2), (loss3, ref_loss3)
    assert int(cnt3) == int(ref_cnt3), (cnt3, ref_cnt3)

    print("KERNEL_OK")
</pallas_src>

<mosaic_0001>
module attributes {stable_mosaic.version = 11 : i64} {
  func.func @_ls_ce_kernel(%arg0: i32, %arg1: i32, %arg2: memref<16x1xi32, #tpu.memory_space<vmem>>, %arg3: memref<16x32xf32, #tpu.memory_space<vmem>>, %arg4: memref<1x1x1xf32, #tpu.memory_space<vmem>>, %arg5: memref<1x1x1xf32, #tpu.memory_space<vmem>>, %arg6: memref<1x1x1xi32, #tpu.memory_space<vmem>>, %arg7: memref<16x1xf32, #tpu.memory_space<vmem>>, %arg8: memref<16x1xf32, #tpu.memory_space<vmem>>, %arg9: memref<16x1xi32, #tpu.memory_space<vmem>>) attributes {dimension_semantics = [#tpu.dimension_semantics<parallel>, #tpu.dimension_semantics<arbitrary>], iteration_bounds = array<i64: 1, 1>, scalar_prefetch = 0 : i64, scratch_operands = 3 : i64, tpu.core_type = #tpu.core_type<tc>, window_params = [{transform_indices = @transform_0, window_bounds = array<i64: 16, 1>}, {transform_indices = @transform_1, window_bounds = array<i64: 16, 32>}, {transform_indices = @transform_2, window_bounds = array<i64: 1, 1, 1>}, {transform_indices = @transform_3, window_bounds = array<i64: 1, 1, 1>}, {transform_indices = @transform_4, window_bounds = array<i64: 1, 1, 1>}]} {
    %c0_i32 = arith.constant 0 : i32
    %0 = arith.cmpi eq, %arg1, %c0_i32 : i32
    %1 = arith.extui %0 : i1 to i32
    %c0_i32_0 = arith.constant 0 : i32
    %2 = arith.cmpi ne, %1, %c0_i32_0 : i32
    scf.if %2 {
      %cst_27 = arith.constant 0.000000e+00 : f32
      %56 = vector.broadcast %cst_27 : f32 to vector<16x1xf32>
      %c0_28 = arith.constant 0 : index
      %c0_29 = arith.constant 0 : index
      %57 = vector.load %arg7[%c0_28, %c0_29] : memref<16x1xf32, #tpu.memory_space<vmem>>, vector<16x1xf32>
      tpu.vector_store %arg7[%c0_28, %c0_29], %56 {strides = array<i32>} : memref<16x1xf32, #tpu.memory_space<vmem>>, vector<16x1xf32>,
      %cst_30 = arith.constant 0.000000e+00 : f32
      %58 = vector.broadcast %cst_30 : f32 to vector<16x1xf32>
      %c0_31 = arith.constant 0 : index
      %c0_32 = arith.constant 0 : index
      %59 = vector.load %arg8[%c0_31, %c0_32] : memref<16x1xf32, #tpu.memory_space<vmem>>, vector<16x1xf32>
      tpu.vector_store %arg8[%c0_31, %c0_32], %58 {strides = array<i32>} : memref<16x1xf32, #tpu.memory_space<vmem>>, vector<16x1xf32>,
      %c0_i32_33 = arith.constant 0 : i32
      %60 = vector.broadcast %c0_i32_33 : i32 to vector<16x1xi32>
      %c0_34 = arith.constant 0 : index
      %c0_35 = arith.constant 0 : index
      %61 = vector.load %arg9[%c0_34, %c0_35] : memref<16x1xi32, #tpu.memory_space<vmem>>, vector<16x1xi32>
      tpu.vector_store %arg9[%c0_34, %c0_35], %60 {strides = array<i32>} : memref<16x1xi32, #tpu.memory_space<vmem>>, vector<16x1xi32>,
    } else {
    }
    %c0 = arith.constant 0 : index
    %c0_1 = arith.constant 0 : index
    %3 = vector.load %arg3[%c0, %c0_1] : memref<16x32xf32, #tpu.memory_space<vmem>>, vector<16x32xf32>
    %c0_2 = arith.constant 0 : index
    %c0_3 = arith.constant 0 : index
    %4 = vector.load %arg2[%c0_2, %c0_3] : memref<16x1xi32, #tpu.memory_space<vmem>>, vector<16x1xi32>
    %c1_i32 = arith.constant 1 : i32
    %5 = arith.muli %arg1, %c1_i32 : i32
    %6 = arith.addi %5, %arg0 : i32
    %c16_i32 = arith.constant 16 : i32
    %7 = arith.muli %6, %c16_i32 : i32
    %8 = tpu.iota {dimensions = array<i32: 0>} : vector<16x1xi32>
    %9 = vector.broadcast %7 : i32 to vector<16x1xi32>
    %10 = arith.addi %9, %8 : vector<16x1xi32>
    %c16_i32_4 = arith.constant 16 : i32
    %11 = vector.broadcast %c16_i32_4 : i32 to vector<16x1xi32>
    %12 = arith.cmpi slt, %10, %11 : vector<16x1xi32>
    %c1_i32_5 = arith.constant 1 : i32
    %13 = vector.broadcast %c1_i32_5 : i32 to vector<16x1xi32>
    %14 = arith.cmpi ne, %4, %13 : vector<16x1xi32>
    %15 = arith.andi %12, %14 : vector<16x1xi1>
    %cst = arith.constant dense<0xFF800000> : vector<16xf32>
    %16 = vector.multi_reduction <maximumf>, %3, %cst [1] : vector<16x32xf32> to vector<16xf32>
    %17 = vector.shape_cast %16 : vector<16xf32> to vector<16x1xf32>
    %18 = tpu.iota {dimensions = array<i32: 1>} : vector<16x32xi32>
    %19 = vector.broadcast %4 : vector<16x1xi32> to vector<16x32xi32>
    %20 = arith.cmpi eq, %18, %19 : vector<16x32xi32>
    %c0_i32_6 = arith.constant 0 : i32
    %21 = arith.sitofp %c0_i32_6 : i32 to f32
    %22 = vector.broadcast %21 : f32 to vector<16x32xf32>
    %23 = arith.select %20, %3, %22 : vector<16x32xi1>, vector<16x32xf32>
    %cst_7 = arith.constant dense<0.000000e+00> : vector<16xf32>
    %24 = vector.multi_reduction <add>, %23, %cst_7 [1] : vector<16x32xf32> to vector<16xf32>
    %25 = vector.shape_cast %24 : vector<16xf32> to vector<16x1xf32>
    %26 = vector.broadcast %17 : vector<16x1xf32> to vector<16x32xf32>
    %27 = arith.subf %3, %26 : vector<16x32xf32>
    %28 = math.exp %27 : vector<16x32xf32>
    %cst_8 = arith.constant dense<0.000000e+00> : vector<16xf32>
    %29 = vector.multi_reduction <add>, %28, %cst_8 [1] : vector<16x32xf32> to vector<16xf32>
    %30 = vector.shape_cast %29 : vector<16xf32> to vector<16x1xf32>
    %cst_9 = arith.constant dense<0.000000e+00> : vector<16xf32>
    %31 = vector.multi_reduction <add>, %27, %cst_9 [1] : vector<16x32xf32> to vector<16xf32>
    %32 = vector.shape_cast %31 : vector<16xf32> to vector<16x1xf32>
    %33 = math.log %30 : vector<16x1xf32>
    %34 = arith.addf %17, %33 : vector<16x1xf32>
    %35 = arith.subf %34, %25 : vector<16x1xf32>
    %cst_10 = arith.constant 3.200000e+01 : f32
    %36 = vector.broadcast %cst_10 : f32 to vector<16x1xf32>
    %37 = arith.mulf %36, %33 : vector<16x1xf32>
    %38 = arith.subf %37, %32 : vector<16x1xf32>
    %c0_11 = arith.constant 0 : index
    %c0_12 = arith.constant 0 : index
    %39 = vector.load %arg7[%c0_11, %c0_12] : memref<16x1xf32, #tpu.memory_space<vmem>>, vector<16x1xf32>
    %cst_13 = arith.constant 0.000000e+00 : f32
    %40 = vector.broadcast %cst_13 : f32 to vector<16x1xf32>
    %41 = arith.select %15, %35, %40 : vector<16x1xi1>, vector<16x1xf32>
    %42 = arith.addf %39, %41 : vector<16x1xf32>
    %c0_14 = arith.constant 0 : index
    %c0_15 = arith.constant 0 : index
    %43 = vector.load %arg7[%c0_14, %c0_15] : memref<16x1xf32, #tpu.memory_space<vmem>>, vector<16x1xf32>
    tpu.vector_store %arg7[%c0_14, %c0_15], %42 {strides = array<i32>} : memref<16x1xf32, #tpu.memory_space<vmem>>, vector<16x1xf32>,
    %c0_16 = arith.constant 0 : index
    %c0_17 = arith.constant 0 : index
    %44 = vector.load %arg8[%c0_16, %c0_17] : memref<16x1xf32, #tpu.memory_space<vmem>>, vector<16x1xf32>
    %cst_18 = arith.constant 0.000000e+00 : f32
    %45 = vector.broadcast %cst_18 : f32 to vector<16x1xf32>
    %46 = arith.select %15, %38, %45 : vector<16x1xi1>, vector<16x1xf32>
    %47 = arith.addf %44, %46 : vector<16x1xf32>
    %c0_19 = arith.constant 0 : index
    %c0_20 = arith.constant 0 : index
    %48 = vector.load %arg8[%c0_19, %c0_20] : memref<16x1xf32, #tpu.memory_space<vmem>>, vector<16x1xf32>
    tpu.vector_store %arg8[%c0_19, %c0_20], %47 {strides = array<i32>} : memref<16x1xf32, #tpu.memory_space<vmem>>, vector<16x1xf32>,
    %c0_21 = arith.constant 0 : index
    %c0_22 = arith.constant 0 : index
    %49 = vector.load %arg9[%c0_21, %c0_22] : memref<16x1xi32, #tpu.memory_space<vmem>>, vector<16x1xi32>
    %50 = arith.extui %15 : vector<16x1xi1> to vector<16x1xi32>
    %51 = arith.addi %49, %50 : vector<16x1xi32>
    %c0_23 = arith.constant 0 : index
    %c0_24 = arith.constant 0 : index
    %52 = vector.load %arg9[%c0_23, %c0_24] : memref<16x1xi32, #tpu.memory_space<vmem>>, vector<16x1xi32>
    tpu.vector_store %arg9[%c0_23, %c0_24], %51 {strides = array<i32>} : memref<16x1xi32, #tpu.memory_space<vmem>>, vector<16x1xi32>,
    %c0_i32_25 = arith.constant 0 : i32
    %53 = arith.cmpi eq, %arg1, %c0_i32_25 : i32
    %54 = arith.extui %53 : i1 to i32
    %c0_i32_26 = arith.constant 0 : i32
    %55 = arith.cmpi ne, %54, %c0_i32_26 : i32
    scf.if %55 {
      %c0_27 = arith.constant 0 : index
      %c0_28 = arith.constant 0 : index
      %56 = vector.load %arg7[%c0_27, %c0_28] : memref<16x1xf32, #tpu.memory_space<vmem>>, vector<16x1xf32>
      %57 = vector.shape_cast %56 : vector<16x1xf32> to vector<1x16x1xf32>
      %cst_29 = arith.constant dense<0.000000e+00> : vector<1xf32>
      %58 = vector.multi_reduction <add>, %57, %cst_29 [1, 2] : vector<1x16x1xf32> to vector<1xf32>
      %59 = vector.shape_cast %58 : vector<1xf32> to vector<1x1x1xf32>
      %60 = vector.extract %59[0, 0, 0] : f32 from vector<1x1x1xf32>
      %61 = vector.broadcast %60 : f32 to vector<1x1xf32>
      %62 = vector.shape_cast %61 : vector<1x1xf32> to vector<1x1x1xf32>
      %c0_30 = arith.constant 0 : index
      %c0_31 = arith.constant 0 : index
      %c0_32 = arith.constant 0 : index
      %63 = vector.load %arg4[%c0_30, %c0_31, %c0_32] : memref<1x1x1xf32, #tpu.memory_space<vmem>>, vector<1x1x1xf32>
      tpu.vector_store %arg4[%c0_30, %c0_31, %c0_32], %62 {strides = array<i32>} : memref<1x1x1xf32, #tpu.memory_space<vmem>>, vector<1x1x1xf32>,
      %c0_33 = arith.constant 0 : index
      %c0_34 = arith.constant 0 : index
      %64 = vector.load %arg8[%c0_33, %c0_34] : memref<16x1xf32, #tpu.memory_space<vmem>>, vector<16x1xf32>
      %65 = vector.shape_cast %64 : vector<16x1xf32> to vector<1x16x1xf32>
      %cst_35 = arith.constant dense<0.000000e+00> : vector<1xf32>
      %66 = vector.multi_reduction <add>, %65, %cst_35 [1, 2] : vector<1x16x1xf32> to vector<1xf32>
      %67 = vector.shape_cast %66 : vector<1xf32> to vector<1x1x1xf32>
      %68 = vector.extract %67[0, 0, 0] : f32 from vector<1x1x1xf32>
      %69 = vector.broadcast %68 : f32 to vector<1x1xf32>
      %70 = vector.shape_cast %69 : vector<1x1xf32> to vector<1x1x1xf32>
      %c0_36 = arith.constant 0 : index
      %c0_37 = arith.constant 0 : index
      %c0_38 = arith.constant 0 : index
      %71 = vector.load %arg5[%c0_36, %c0_37, %c0_38] : memref<1x1x1xf32, #tpu.memory_space<vmem>>, vector<1x1x1xf32>
      tpu.vector_store %arg5[%c0_36, %c0_37, %c0_38], %70 {strides = array<i32>} : memref<1x1x1xf32, #tpu.memory_space<vmem>>, vector<1x1x1xf32>,
      %c0_39 = arith.constant 0 : index
      %c0_40 = arith.constant 0 : index
      %72 = vector.load %arg9[%c0_39, %c0_40] : memref<16x1xi32, #tpu.memory_space<vmem>>, vector<16x1xi32>
      %73 = vector.shape_cast %72 : vector<16x1xi32> to vector<1x16x1xi32>
      %cst_41 = arith.constant dense<0> : vector<1xi32>
      %74 = vector.multi_reduction <add>, %73, %cst_41 [1, 2] : vector<1x16x1xi32> to vector<1xi32>
      %75 = vector.shape_cast %74 : vector<1xi32> to vector<1x1x1xi32>
      %76 = vector.extract %75[0, 0, 0] : i32 from vector<1x1x1xi32>
      %77 = vector.broadcast %76 : i32 to vector<1x1xi32>
      %78 = vector.shape_cast %77 : vector<1x1xi32> to vector<1x1x1xi32>
      %c0_42 = arith.constant 0 : index
      %c0_43 = arith.constant 0 : index
      %c0_44 = arith.constant 0 : index
      %79 = vector.load %arg6[%c0_42, %c0_43, %c0_44] : memref<1x1x1xi32, #tpu.memory_space<vmem>>, vector<1x1x1xi32>
      tpu.vector_store %arg6[%c0_42, %c0_43, %c0_44], %78 {strides = array<i32>} : memref<1x1x1xi32, #tpu.memory_space<vmem>>, vector<1x1x1xi32>,
    } else {
    }
    return
  }
  func.func @transform_0(%arg0: i32, %arg1: i32) -> (i32, i32) {
    %c1_i32 = arith.constant 1 : i32
    %0 = arith.muli %arg1, %c1_i32 : i32
    %1 = arith.addi %0, %arg0 : i32
    %c0_i32 = arith.constant 0 : i32
    %2 = arith.minsi %1, %c0_i32 : i32
    %c0_i32_0 = arith.constant 0 : i32
    %c0_i32_1 = arith.constant 0 : i32
    return %2, %c0_i32_0 : i32, i32
  }
  func.func @transform_1(%arg0: i32, %arg1: i32) -> (i32, i32) {
    %c1_i32 = arith.constant 1 : i32
    %0 = arith.muli %arg1, %c1_i32 : i32
    %1 = arith.addi %0, %arg0 : i32
    %c0_i32 = arith.constant 0 : i32
    %2 = arith.minsi %1, %c0_i32 : i32
    %c0_i32_0 = arith.constant 0 : i32
    %c0_i32_1 = arith.constant 0 : i32
    return %2, %c0_i32_0 : i32, i32
  }
  func.func @transform_2(%arg0: i32, %arg1: i32) -> (i32, i32, i32) {
    %c0_i32 = arith.constant 0 : i32
    %c0_i32_0 = arith.constant 0 : i32
    %c0_i32_1 = arith.constant 0 : i32
    return %arg0, %c0_i32, %c0_i32_0 : i32, i32, i32
  }
  func.func @transform_3(%arg0: i32, %arg1: i32) -> (i32, i32, i32) {
    %c0_i32 = arith.constant 0 : i32
    %c0_i32_0 = arith.constant 0 : i32
    %c0_i32_1 = arith.constant 0 : i32
    return %arg0, %c0_i32, %c0_i32_0 : i32, i32, i32
  }
  func.func @transform_4(%arg0: i32, %arg1: i32) -> (i32, i32, i32) {
    %c0_i32 = arith.constant 0 : i32
    %c0_i32_0 = arith.constant 0 : i32
    %c0_i32_1 = arith.constant 0 : i32
    return %arg0, %c0_i32, %c0_i32_0 : i32, i32, i32
  }
}

</mosaic_0001>

<bundles_post_ra>
// kernel: tpu_custom_call.1
= control target key start
LH: loop header
LB: loop body
LE: loop exit
PB: predicated region body
PF: predicated region fallthrough
CT: control target
= control target key end

     0   :  { %10 = vsyncpa [#allocation6], 0  ;;  %vm109_vm0 = vcmask 261120   ;;  %vm84_vm1 = vcmask 7168   ;;  %v395_v4 = vmov 0   ;;  %s530_s0 = inlined_call_operand.vmem [shape: s32[16,1], index: 0, kind: input, shape index: {}]   ;;  %s531_s1 = inlined_call_operand.vmem [shape: f32[16,32], index: 1, kind: input, shape index: {}]   ;;  %s532_s2 = inlined_call_operand.hbm [shape: f32[1,1,1], index: 2, kind: output, shape index: {0}]   ;;  %s533_s3 = inlined_call_operand.hbm [shape: f32[1,1,1], index: 3, kind: output, shape index: {1}]   ;;  %s534_s4 = inlined_call_operand.hbm [shape: s32[1,1,1], index: 4, kind: output, shape index: {2}]  }
   0x1   :  { %v91_v0 = vld [vmem:[%s531_s1] sm:$0xff]  ;;  %v92_v1 = vld [vmem:[%s531_s1 + $0x8] sm:$0xff]  ;;  %315 = vset.pattern.permute.xlu1 %v395_v4  ;;  %89 = vst.msk [vmem:[#allocation4] sm:$0xff] %vm84_vm1, %v395_v4  ;;  %90 = vst.msk [vmem:[#allocation4 + $0x8] sm:$0xff] %vm84_vm1, %v395_v4 }
   0x2   :  { %v434_v2 = vld [vmem:[%s530_s0] sm:$0xff]  ;;  %v110_v3 = vsel %vm109_vm0, %v91_v0, -inf }
   0x3   :  { %11 = vsyncpa [#allocation8], 0  ;;  %316 = vset.pattern.permute.xlu0 %v395_v4  ;;  %119 = vperm.xlu1 %315, %v434_v2   ;;  %v443_v5 = vld [vmem:[%s530_s0 + $0x8] sm:$0xff]  ;;  %v113_v6 = vsel %vm109_vm0, %v92_v1, -inf  ;;  %vm105_vm2 = vcmp.ne.s32.totalorder %v434_v2, 1  ;;  %v116_v17 = vlaneseq  ;;  %v396_v33 = vmov 0.0  }
   0x4   :  { %111 = vmax.xlane.f32.xlu0 %v110_v3  ;;  %vm106_vm3 = vcmp.ne.s32.totalorder %v443_v5, 1  ;;  %v183_v7 = vsel %vm105_vm2, 1, %v395_v4  ;;  %85 = vst.msk [vmem:[#allocation2] sm:$0xff] %vm84_vm1, %v396_v33  ;;  %86 = vst.msk [vmem:[#allocation2 + $0x8] sm:$0xff] %vm84_vm1, %v396_v33  ;;  %s397_s0 = smov [#allocation5]   ;;  %vm207_vm6 = vcmask 0  }
   0x5   :  { %v184_v8 = vsel %vm106_vm3, 1, %v395_v4  ;;  %v117_v21 = vand.u32 127, %v116_v17  ;;  %87 = vst.msk [vmem:[#allocation3] sm:$0xff] %vm84_vm1, %v396_v33  ;;  %88 = vst.msk [vmem:[#allocation3 + $0x8] sm:$0xff] %vm84_vm1, %v396_v33  ;;  %s257_s22 = sshll.u32 %s397_s0, 4  ;;  %s398_s24 = smov [#allocation7]   ;;  %s258_s22 = int_to_ptr.vmem [resolvable:$true] %s257_s22 }
   0x6   :  { %s267_s25 = sshll.u32 %s398_s24, 4  ;;  %s399_s26 = smov [#allocation9]   ;;  %s268_s25 = int_to_ptr.vmem [resolvable:$true] %s267_s25 }
   0x7   :  { %122 = vperm.xlu1 %315, %v443_v5   ;;  %s277_s27 = sshll.u32 %s399_s26, 4  ;;  %s325_s28 = scalar_lea.vmem %s258_s22, 16  ;;  %s496_s27 = int_to_ptr.vmem [resolvable:$true] %s277_s27 }
   0x8   :  { %114 = vmax.xlane.f32.xlu0 %v113_v6  ;;  %v181_v9 = vld [vmem:[#allocation4] sm:$0xff]  ;;  %v182_v10 = vld [vmem:[#allocation4 + $0x8] sm:$0xff]  ;;  %p326_p0 = scmp.ne.s32.totalorder %s258_s22, %s325_s28  ;;  %s329_s29 = scalar_lea.vmem %s258_s22, 32 }
   0x9   :  { %v185_v11 = vadd.s32 %v183_v7, %v181_v9  ;;  %v186_v12 = vadd.s32 %v184_v8, %v182_v10  ;;  %p330_p1 = scmp.lt.s32.totalorder %s258_s22, %s258_s22  ;;  %p331_p2 = scmp.lt.s32.totalorder %s329_s29, %s325_s28 }
   0xb   :  { %187 = vst.msk [vmem:[#allocation4] sm:$0xff] %vm84_vm1, %v185_v11  ;;  %188 = vst.msk [vmem:[#allocation4 + $0x8] sm:$0xff] %vm84_vm1, %v186_v12  ;;  %v164_v54 = vld [vmem:[#allocation2] sm:$0xff]  ;;  %v165_v3 = vld [vmem:[#allocation2 + $0x8] sm:$0xff]  ;;  %p332_p3 = por %p331_p2, %p330_p1 }
   0xc   :  { %v173_v57 = vld [vmem:[#allocation3] sm:$0xff]  ;;  %v174_v6 = vld [vmem:[#allocation3 + $0x8] sm:$0xff] }
   0xd   :  { %p333_p4 = pnand %p332_p3, %p326_p0 }
  0x12   :  { %v225_v34 = vld [vmem:[#allocation4] sm:$0xff]  ;;  %v226_v35 = vld [vmem:[#allocation4 + $0x8] sm:$0xff] }
  0x13   :  { %v227_v36 = vsel %vm84_vm1, %v225_v34, 0  ;;  %v228_v37 = vsel %vm84_vm1, %v226_v35, 0 }
  0x14   :  { %v229_v38 = vadd.s32 %v228_v37, %v227_v36 }
  0x16   :  { %v231_v39 = vshrl.u32 %v229_v38, 16  ;;  %v230_v41 = vand.u32 65535, %v229_v38 }
  0x18   :  { %v233_v40 = vcvt.s32.f32 %v231_v39  ;;  %v232_v42 = vcvt.s32.f32 %v230_v41 }
  0x82   :  { %v120_v20 = vpop.permute.xlu1 %119 }
  0x83   :  { %vm124_vm4 = vcmp.eq.s32.totalorder %v117_v21, %v120_v20 }
  0x84   :  { %v126_v24 = vsel %vm124_vm4, %v91_v0, 0.0 }
  0x85   :  { %v128_v26 = vsel %vm109_vm0, %v126_v24, 0.0 }
  0x86   :  { %v123_v22 = vpop.permute.xlu1 %122 }
  0x87   :  { %vm125_vm5 = vcmp.eq.s32.totalorder %v117_v21, %v123_v22 }
  0x88   :  { %v127_v28 = vsel %vm125_vm5, %v92_v1, 0.0 }
  0x89   :  { %v131_v30 = vsel %vm109_vm0, %v127_v28, 0.0 }
  0x91   :  { %v112_v13 = vpop.xlane.xlu0 %111 }
  0x92   :  { %v134_v14 = vsub.f32 %v91_v0, %v112_v13 }
  0x94   :  { %v136_v15 = vmul.f32 1.442695, %v134_v14  ;;  %v146_v31 = vsel %vm109_vm0, %v134_v14, 0.0 }
  0x95   :  { %v115_v16 = vpop.xlane.xlu0 %114 }
  0x96   :  { %317 = vpow2.f32 %v136_v15  ;;  %v135_v18 = vsub.f32 %v92_v1, %v115_v16 }
  0x98   :  { %v138_v19 = vmul.f32 1.442695, %v135_v18  ;;  %v149_v32 = vsel %vm109_vm0, %v135_v18, 0.0 }
  0x9a   :  { %319 = vpow2.f32 %v138_v19 }
  0xa0   :  { %v318_v23 = vpop.eup %317 }
  0xa1   :  { %v140_v25 = vsel %vm109_vm0, %v318_v23, 0.0 }
  0xa2   :  { %141 = vadd.xlane.f32.xlu0 %v140_v25 }
  0xa4   :  { %v320_v27 = vpop.eup %319 }
  0xa5   :  { %v143_v29 = vsel %vm109_vm0, %v320_v27, 0.0 }
  0xa6   :  { %144 = vadd.xlane.f32.xlu1 %v143_v29  ;;  %129 = vadd.xlane.f32.xlu0 %v128_v26 }
  0xaa   :  { %132 = vadd.xlane.f32.xlu0 %v131_v30 }
  0xae   :  { %147 = vadd.xlane.f32.xlu0 %v146_v31 }
  0xb2   :  { %150 = vadd.xlane.f32.xlu0 %v149_v32 }
  0xb6   :  { %236 = vadd.xlane.f32.xlu0 %v233_v40 }
  0xba   :  { %234 = vadd.xlane.f32.xlu0 %v232_v42 }
 0x12f   :  { %v142_v43 = vpop.xlane.xlu0 %141 }
 0x130   :  { %321 = vlog2.f32 %v142_v43 }
 0x133   :  { %v130_v44 = vpop.xlane.xlu0 %129  ;;  %v145_v45 = vpop.xlane.xlu1 %144 }
 0x134   :  { %323 = vlog2.f32 %v145_v45 }
 0x137   :  { %v133_v46 = vpop.xlane.xlu0 %132 }
 0x13a   :  { %v322_v47 = vpop.eup %321 }
 0x13b   :  { %v153_v48 = vmul.f32 0.6931472, %v322_v47  ;;  %v148_v49 = vpop.xlane.xlu0 %147 }
 0x13d   :  { %v156_v50 = vadd.f32 %v153_v48, %v112_v13  ;;  %v160_v51 = vmul.f32 32.0, %v153_v48 }
 0x13e   :  { %v324_v52 = vpop.eup %323 }
 0x13f   :  { %v158_v53 = vsub.f32 %v156_v50, %v130_v44  ;;  %v155_v55 = vmul.f32 0.6931472, %v324_v52  ;;  %v162_v56 = vsub.f32 %v160_v51, %v148_v49  ;;  %v151_v0 = vpop.xlane.xlu0 %150 }
 0x141   :  { %v166_v58 = vsel %vm105_vm2, %v158_v53, 0.0  ;;  %v157_v59 = vadd.f32 %v155_v55, %v115_v16  ;;  %v175_v60 = vsel %vm105_vm2, %v162_v56, 0.0  ;;  %v161_v61 = vmul.f32 32.0, %v155_v55 }
 0x142   :  { %v168_v62 = vadd.f32 %v166_v58, %v164_v54  ;;  %v177_v63 = vadd.f32 %v175_v60, %v173_v57 }
 0x143   :  { %v159_v1 = vsub.f32 %v157_v59, %v133_v46  ;;  %v163_v4 = vsub.f32 %v161_v61, %v151_v0  ;;  %v237_v19 = vpop.xlane.xlu0 %236 }
 0x144   :  { %171 = vst.msk [vmem:[#allocation2] sm:$0xff] %vm84_vm1, %v168_v62  ;;  %179 = vst.msk [vmem:[#allocation3] sm:$0xff] %vm84_vm1, %v177_v63  ;;  %v239_v20 = vcvt.f32.s32 %v237_v19 }
 0x145   :  { %v167_v7 = vsel %vm106_vm3, %v159_v1, 0.0  ;;  %v176_v8 = vsel %vm106_vm3, %v163_v4, 0.0 }
 0x146   :  { %v169_v2 = vadd.f32 %v167_v7, %v165_v3  ;;  %v178_v9 = vadd.f32 %v176_v8, %v174_v6  ;;  %v240_v22 = vshll.u32 %v239_v20, 16 }
 0x147   :  { %v235_v21 = vpop.xlane.xlu0 %234 }
 0x148   :  { %172 = vst.msk [vmem:[#allocation2 + $0x8] sm:$0xff] %vm84_vm1, %v169_v2  ;;  %180 = vst.msk [vmem:[#allocation3 + $0x8] sm:$0xff] %vm84_vm1, %v178_v9  ;;  %v238_v23 = vcvt.f32.s32 %v235_v21 }
 0x14a   :  { %v241_v24 = vadd.s32 %v240_v22, %v238_v23 }
 0x14b   :  { %v192_v10 = vld [vmem:[#allocation2] sm:$0xff]  ;;  %v209_v16 = vld [vmem:[#allocation3] sm:$0xff] }
 0x14c   :  { %v194_v13 = vsel %vm84_vm1, %v192_v10, 0.0  ;;  %v211_v5 = vsel %vm84_vm1, %v209_v16, 0.0  ;;  %v242_v25 = vrot.slane %v241_v24, 4 }
 0x14e   :  { %v243_v26 = vadd.s32 %v242_v25, %v241_v24 }
 0x14f   :  { %v193_v11 = vld [vmem:[#allocation2 + $0x8] sm:$0xff]  ;;  %v210_v12 = vld [vmem:[#allocation3 + $0x8] sm:$0xff] }
 0x150   :  { %v195_v14 = vsel %vm84_vm1, %v193_v11, 0.0  ;;  %v212_v17 = vsel %vm84_vm1, %v210_v12, 0.0  ;;  %v244_v31 = vrot.slane %v243_v26, 2 }
 0x151   :  { %v196_v15 = vadd.f32 %v195_v14, %v194_v13  ;;  %v213_v18 = vadd.f32 %v212_v17, %v211_v5 }
 0x152   :  { %v245_v36 = vadd.s32 %v244_v31, %v243_v26 }
 0x153   :  { %197 = vadd.xlane.f32.xlu0 %v196_v15 }
 0x154   :  { %v246_v41 = vrot.slane %v245_v36, 1 }
 0x156   :  { %v247_v44 = vadd.s32 %v246_v41, %v245_v36 }
 0x157   :  { %214 = vadd.xlane.f32.xlu0 %v213_v18 }
 0x1e0   :  { %v198_v27 = vpop.xlane.xlu0 %197 }
 0x1e1   :  { %v199_v28 = vrot.slane %v198_v27, 4 }
 0x1e3   :  { %v200_v29 = vadd.f32 %v199_v28, %v198_v27 }
 0x1e4   :  { %v215_v30 = vpop.xlane.xlu0 %214 }
 0x1e5   :  { %v201_v32 = vrot.slane %v200_v29, 2  ;;  %v216_v33 = vrot.slane %v215_v30, 4 }
 0x1e7   :  { %v217_v34 = vadd.f32 %v216_v33, %v215_v30  ;;  %v202_v35 = vadd.f32 %v201_v32, %v200_v29 }
 0x1e9   :  { %v218_v37 = vrot.slane %v217_v34, 2  ;;  %v203_v38 = vrot.slane %v202_v35, 1 }
 0x1eb   :  { %v219_v39 = vadd.f32 %v218_v37, %v217_v34  ;;  %v204_v40 = vadd.f32 %v203_v38, %v202_v35 }
 0x1ed   :  { %304 = vpush %v204_v40  ;;  %v220_v42 = vrot.slane %v219_v39, 1 }
 0x1ef   :  { %v221_v43 = vadd.f32 %v220_v42, %v219_v39 }
 0x1f1   :  { %306 = vpush %v221_v43 }
 0x1f2   :  { %308 = vpush %v247_v44 }
 0x21e   :  { %s305_s23 = spop %304 }
 0x21f   :  { %v206_v45 = vstv %s305_s23 }
 0x220   :  { %208 = vst.msk [vmem:[#allocation5] sm:$0x1] %vm207_vm6, %v206_v45 }
 0x221   :  { %336 = shalt.err (!%p333_p4)
}
 0x222   :  { %s337_s6 = scalar_lea.hbm %s532_s2, 16 }
 0x223   :  { %p338_p5 = scmp.ne.s32.totalorder %s532_s2, %s337_s6  ;;  %p341_p6 = scmp.lt.u32.totalorder %s337_s6, %s532_s2 }
 0x225   :  { %p343_p7 = pnand %p341_p6, %p338_p5 }
 0x227   :  { %346 = shalt.err (!%p343_p7)
}
 0x228   :  { %260 = dma.vmem_to_hbm [thread:$0]  %s258_s22, 16, %s532_s2, [#allocation6]  }
 0x229   :  { %s307_s13 = spop %306  ;;  %s347_s15 = scalar_lea.vmem %s268_s25, 16 }
 0x22a   :  { %v223_v46 = vstv %s307_s13  ;;  %s309_s14 = spop %308  ;;  %p348_p8 = scmp.ne.s32.totalorder %s268_s25, %s347_s15 }
 0x22b   :  { %224 = vst.msk [vmem:[#allocation7] sm:$0x1] %vm207_vm6, %v223_v46  ;;  %v249_v47 = vstv %s309_s14  ;;  %s351_s16 = scalar_lea.vmem %s268_s25, 32  ;;  %p352_p9 = scmp.lt.s32.totalorder %s268_s25, %s268_s25 }
 0x22c   :  { %250 = vst.msk [vmem:[#allocation9] sm:$0x1] %vm207_vm6, %v249_v47  ;;  %p353_p10 = scmp.lt.s32.totalorder %s351_s16, %s347_s15 }
 0x22e   :  { %p354_p11 = por %p353_p10, %p352_p9 }
 0x230   :  { %p355_p12 = pnand %p354_p11, %p348_p8 }
 0x232   :  { %358 = shalt.err (!%p355_p12)
}
 0x233   :  { %s359_s18 = scalar_lea.hbm %s533_s3, 16 }
 0x234   :  { %p360_p13 = scmp.ne.s32.totalorder %s533_s3, %s359_s18  ;;  %p363_p0 = scmp.lt.u32.totalorder %s359_s18, %s533_s3 }
 0x236   :  { %p365_p1 = pnand %p363_p0, %p360_p13 }
 0x238   :  { %368 = shalt.err (!%p365_p1)
}
 0x239   :  { %270 = dma.vmem_to_hbm [thread:$0]  %s268_s25, 16, %s533_s3, [#allocation8]  }
 0x23a   :  { %s369_s23 = scalar_lea.vmem %s496_s27, 16  ;;  %s373_s24 = scalar_lea.vmem %s496_s27, 32 }
 0x23b   :  { %p370_p2 = scmp.ne.s32.totalorder %s496_s27, %s369_s23  ;;  %p374_p3 = scmp.lt.s32.totalorder %s496_s27, %s496_s27 }
 0x23c   :  { %p375_p4 = scmp.lt.s32.totalorder %s373_s24, %s369_s23 }
 0x23e   :  { %p376_p5 = por %p375_p4, %p374_p3 }
 0x240   :  { %p377_p6 = pnand %p376_p5, %p370_p2 }
 0x242   :  { %380 = shalt.err (!%p377_p6)
}
 0x243   :  { %s381_s29 = scalar_lea.hbm %s534_s4, 16 }
 0x244   :  { %p382_p7 = scmp.ne.s32.totalorder %s534_s4, %s381_s29  ;;  %p385_p8 = scmp.lt.u32.totalorder %s381_s29, %s534_s4 }
 0x246   :  { %p387_p9 = pnand %p385_p8, %p382_p7 }
 0x248   :  { %390 = shalt.err (!%p387_p9)
}
 0x249   :  { %280 = dma.vmem_to_hbm [thread:$0]  %s496_s27, 16, %s534_s4, [#allocation8]  }
 0x24a   :  { %391 = dma.done.wait [#allocation6], 16  }
 0x24b   :  { %392 = vsyncadd [#allocation6], 4294967280 }
 0x24c   :  { %393 = dma.done.wait [#allocation8], 32  }
 0x24d   :  { %394 = vsyncadd [#allocation8], 4294967264 }
 0x24e   :  { %290 = vsyncpa [#allocation6], 1 }
 0x24f   :  { %291 = vsyncpa [#allocation8], 1 }

</bundles_post_ra>
